<compile_context>
chip_gen: v6e
topology: v6e:2x2x1
jax: 0.10.0
libtpu: 0.0.40
codegen_flags: <defaults>
</compile_context>

<pallas_src>
import functools
import math

import jax
import jax.numpy as jnp
from jax.experimental import pallas as pl
from jax.experimental.pallas import tpu as pltpu

LN_EPS = 1e-5                    # PyTorch nn.LayerNorm default
_ROW_TILE = 512                  # v6e-friendly; v5e OK because vmem limit is raised
_VMEM_LIMIT = 64 * 1024 * 1024   # explicit scoped-VMEM limit for all calls


# ----------------------------- small helpers --------------------------------

def _layernorm_f32(x_f32, g, b):
    mu = jnp.mean(x_f32, axis=-1, keepdims=True)
    var = jnp.mean((x_f32 - mu) ** 2, axis=-1, keepdims=True)
    return (x_f32 - mu) * jax.lax.rsqrt(var + LN_EPS) * g + b


def _row_block(M):
    return M if M <= _ROW_TILE else _ROW_TILE


@functools.lru_cache(maxsize=1)
def _weight_pipeline_mode():
    """pl.Buffered(1) for constant-index (VMEM-resident) operands, if supported."""
    try:
        mode = pl.Buffered(1)

        def _probe(x_ref, w_ref, o_ref):
            o_ref[...] = x_ref[...] + w_ref[...]

        out = pl.pallas_call(
            _probe,
            out_shape=jax.ShapeDtypeStruct((16, 128), jnp.float32),
            grid=(2,),
            in_specs=[pl.BlockSpec((8, 128), lambda i: (i, 0)),
                      pl.BlockSpec((8, 128), lambda i: (0, 0), pipeline_mode=mode)],
            out_specs=pl.BlockSpec((8, 128), lambda i: (i, 0)),
        )(jnp.zeros((16, 128), jnp.float32), jnp.zeros((8, 128), jnp.float32))
        jax.block_until_ready(out)
        return mode
    except Exception:
        return None


def _const_spec(shape):
    """BlockSpec for an operand whose block index never changes (resident weight)."""
    idx = lambda i, _s=shape: (0,) * len(_s)
    mode = _weight_pipeline_mode()
    if mode is None:
        return pl.BlockSpec(shape, idx)
    return pl.BlockSpec(shape, idx, pipeline_mode=mode)


# ----------------------------- Pallas kernels -------------------------------

def ln_qkv_kernel(x_ref, g_ref, b_ref, w_ref, wb_ref, o_ref):
    """out = LayerNorm(x) @ W_qkv + b_qkv for one (TM, D) row tile (bf16 store)."""
    x = x_ref[...].astype(jnp.float32)
    xn = _layernorm_f32(x, g_ref[...], b_ref[...])
    y = jnp.dot(xn.astype(jnp.bfloat16), w_ref[...],
                preferred_element_type=jnp.float32) + wb_ref[...]
    o_ref[...] = y.astype(o_ref.dtype)


def _attention_body(qkv_ref, mask, o_ref, heads, head_dim):
    """Attention for a (Bt, L, 3D) block. Scale is pre-folded into W_qkv."""
    D = heads * head_dim
    Bt = qkv_ref.shape[0]
    dn = (((1,), (1,)), ((), ()))                       # q @ k^T (contract feature dim)
    hpg = max(1, min(heads, 128 // max(head_dim, 1)))   # heads per <=128-lane store

    for b in range(Bt):                                 # static unroll over batch block
        qkv = qkv_ref[b]                                # (L, 3D) bf16
        for g0 in range(0, heads, hpg):
            g1 = min(g0 + hpg, heads)
            outs = []
            for h in range(g0, g1):                     # static unroll over heads
                q = qkv[:, h * head_dim:(h + 1) * head_dim]
                k = qkv[:, D + h * head_dim:D + (h + 1) * head_dim]
                v = qkv[:, 2 * D + h * head_dim:2 * D + (h + 1) * head_dim]
                s = jax.lax.dot_general(q, k, dn, preferred_element_type=jnp.float32)
                if mask is not None:
                    s = s + mask
                s = s - jnp.max(s, axis=-1, keepdims=True)
                p = jnp.exp(s)
                p = p * pl.reciprocal(jnp.sum(p, axis=-1, keepdims=True), approx=True)
                outs.append(jnp.dot(p.astype(jnp.bfloat16), v,
                                    preferred_element_type=jnp.float32))
            chunk = outs[0] if len(outs) == 1 else jnp.concatenate(outs, axis=-1)
            o_ref[b, :, g0 * head_dim:g1 * head_dim] = chunk.astype(o_ref.dtype)


def attn_kernel_masked(qkv_ref, mask_ref, o_ref, *, heads, head_dim):
    _attention_body(qkv_ref, mask_ref[...].astype(jnp.float32), o_ref, heads, head_dim)


def attn_kernel_nomask(qkv_ref, o_ref, *, heads, head_dim):
    _attention_body(qkv_ref, None, o_ref, heads, head_dim)


def out_mlp_kernel(x_ref, a_ref, wo_ref, bo_ref, g2_ref, b2_ref,
                   wfc_ref, bfc_ref, wpr_ref, bpr_ref, o_ref):
    """Fused: x1 = x + attn @ Wout + bout ; out = x1 + c_proj(QuickGELU(c_fc(LN2(x1))))."""
    x = x_ref[...].astype(jnp.float32)
    a = a_ref[...]                                      # already bf16
    x1 = x + jnp.dot(a, wo_ref[...],
                     preferred_element_type=jnp.float32) + bo_ref[...]
    xn = _layernorm_f32(x1, g2_ref[...], b2_ref[...])
    h = jnp.dot(xn.astype(jnp.bfloat16), wfc_ref[...],
                preferred_element_type=jnp.float32) + bfc_ref[...]
    h = h * jax.nn.sigmoid(1.702 * h)                   # QuickGELU (f32 VPU/EUP)
    y = jnp.dot(h.astype(jnp.bfloat16), wpr_ref[...],
                preferred_element_type=jnp.float32) + bpr_ref[...]
    o_ref[...] = (x1 + y).astype(o_ref.dtype)


# ----------------------------- pallas_call wrappers --------------------------

def ln_qkv(x2d, g, b, w_bf16, wb):
    M, D = x2d.shape
    E = w_bf16.shape[1]
    tm = _row_block(M)
    return pl.pallas_call(
        ln_qkv_kernel,
        out_shape=jax.ShapeDtypeStruct((M, E), jnp.bfloat16),     # bf16 intermediate
        grid=(pl.cdiv(M, tm),),
        in_specs=[
            pl.BlockSpec((tm, D), lambda i: (i, 0)),              # activation tile streams
            _const_spec((1, D)),                                  # LN gamma (resident)
            _const_spec((1, D)),                                  # LN beta
            _const_spec((D, E)),                                  # W_qkv (bf16, resident)
            _const_spec((1, E)),                                  # b_qkv (scale-folded)
        ],
        out_specs=pl.BlockSpec((tm, E), lambda i: (i, 0)),
        compiler_params=pltpu.CompilerParams(
            dimension_semantics=("parallel",),
            vmem_limit_bytes=_VMEM_LIMIT),
    )(x2d, g, b, w_bf16, wb)


def _attn_batch_block(N, L, D):
    """Batch elements per attention grid step (amortizes per-step overhead)."""
    per_elem = L * 4 * D * 2 * 2          # qkv(3D)+out(D), bf16, double-buffered
    budget = 8 * 1024 * 1024
    bt = max(1, min(N, budget // max(per_elem, 1)))
    while N % bt:
        bt -= 1
    return bt


def attention(qkv3, mask, heads):
    N, L, threeD = qkv3.shape
    D = threeD // 3
    hd = D // heads
    Bt = _attn_batch_block(N, L, D)
    in_specs = [pl.BlockSpec((Bt, L, threeD), lambda n: (n, 0, 0))]
    args = [qkv3]
    if mask is None:
        kern = functools.partial(attn_kernel_nomask, heads=heads, head_dim=hd)
    else:
        kern = functools.partial(attn_kernel_masked, heads=heads, head_dim=hd)
        in_specs.append(_const_spec((L, L)))              # mask: resident, single-buffer
        args.append(mask)
    return pl.pallas_call(
        kern,
        out_shape=jax.ShapeDtypeStruct((N, L, D), jnp.bfloat16),  # bf16 intermediate
        grid=(N // Bt,),
        in_specs=in_specs,
        out_specs=pl.BlockSpec((Bt, L, D), lambda n: (n, 0, 0)),
        compiler_params=pltpu.CompilerParams(
            dimension_semantics=("parallel",),
            vmem_limit_bytes=_VMEM_LIMIT),
    )(*args)


def out_proj_mlp(x2d, a2d, wo, bo, g2, b2, wfc, bfc, wpr, bpr):
    M, D = x2d.shape
    E = wfc.shape[1]
    tm = _row_block(M)
    return pl.pallas_call(
        out_mlp_kernel,
        out_shape=jax.ShapeDtypeStruct((M, D), jnp.float32),       # residual stays f32
        grid=(pl.cdiv(M, tm),),
        in_specs=[
            pl.BlockSpec((tm, D), lambda i: (i, 0)),   # x tile (f32)
            pl.BlockSpec((tm, D), lambda i: (i, 0)),   # attention tile (bf16)
            _const_spec((D, D)),                       # W_out (bf16, resident)
            _const_spec((1, D)),
            _const_spec((1, D)),                       # LN2 gamma
            _const_spec((1, D)),                       # LN2 beta
            _const_spec((D, E)),                       # W_fc (bf16)
            _const_spec((1, E)),
            _const_spec((E, D)),                       # W_proj (bf16)
            _const_spec((1, D)),
        ],
        out_specs=pl.BlockSpec((tm, D), lambda i: (i, 0)),
        compiler_params=pltpu.CompilerParams(
            dimension_semantics=("parallel",),
            vmem_limit_bytes=_VMEM_LIMIT),
    )(x2d, a2d, wo, bo, g2, b2, wfc, bfc, wpr, bpr)


# ----------------------------- parameter preparation -------------------------

def prepare_params(params, heads):
    """One-time weight prep: fold softmax scale into Q slice, cast weights to bf16."""
    D = params[0]["w_qkv"].shape[0]
    hd = D // heads
    scale = 1.0 / math.sqrt(hd)
    prepped = []
    for p in params:
        w_qkv = p["w_qkv"].at[:, :D].multiply(scale)
        b_qkv = p["b_qkv"].at[:, :D].multiply(scale)
        prepped.append(dict(
            ln1_g=p["ln1_g"], ln1_b=p["ln1_b"],
            w_qkv=w_qkv.astype(jnp.bfloat16), b_qkv=b_qkv,
            w_out=p["w_out"].astype(jnp.bfloat16), b_out=p["b_out"],
            ln2_g=p["ln2_g"], ln2_b=p["ln2_b"],
            w_fc=p["w_fc"].astype(jnp.bfloat16), b_fc=p["b_fc"],
            w_proj=p["w_proj"].astype(jnp.bfloat16), b_proj=p["b_proj"],
        ))
    return prepped


# ----------------------------- Transformer forward ---------------------------

def transformer_forward(x, prepped_params, heads, attn_mask=None):
    """x: (L, N, D) like torch's batch_first=False. Returns (L, N, D)."""
    L, N, D = x.shape
    mask = None if attn_mask is None else attn_mask.astype(jnp.float32)

    # Internal layout (N, L, D): a single transpose in/out of the whole stack.
    xb = jnp.transpose(x, (1, 0, 2)).astype(jnp.float32)   # (N, L, D)
    M = N * L

    for p in prepped_params:
        x2d = xb.reshape(M, D)
        qkv = ln_qkv(x2d, p["ln1_g"], p["ln1_b"], p["w_qkv"], p["b_qkv"])   # (M,3D) bf16
        a3 = attention(qkv.reshape(N, L, 3 * D), mask, heads)               # (N,L,D) bf16
        x2d = out_proj_mlp(x2d, a3.reshape(M, D),
                           p["w_out"], p["b_out"],
                           p["ln2_g"], p["ln2_b"],
                           p["w_fc"], p["b_fc"],
                           p["w_proj"], p["b_proj"])
        xb = x2d.reshape(N, L, D)

    return jnp.transpose(xb, (1, 0, 2)).astype(x.dtype)     # back to (L, N, D)


# ----------------------------- pure-JAX reference ----------------------------

def _ln_ref(x, g, b):
    mu = x.mean(-1, keepdims=True)
    var = ((x - mu) ** 2).mean(-1, keepdims=True)
    return (x - mu) / jnp.sqrt(var + LN_EPS) * g + b


def reference_forward(x, params, heads, attn_mask=None):
    L, N, D = x.shape
    H = heads
    hd = D // H
    scale = 1.0 / math.sqrt(hd)
    mask = (jnp.zeros((L, L), jnp.float32) if attn_mask is None
            else attn_mask.astype(jnp.float32))
    for p in params:
        xn = _ln_ref(x, p["ln1_g"][0], p["ln1_b"][0])
        qkv = xn @ p["w_qkv"] + p["b_qkv"][0]
        q, k, v = qkv[..., :D], qkv[..., D:2 * D], qkv[..., 2 * D:]

        def th(t):
            return t.reshape(L, N, H, hd).transpose(1, 2, 0, 3).reshape(N * H, L, hd)

        qh, kh, vh = th(q), th(k), th(v)
        s = jnp.einsum("blh,bmh->blm", qh, kh) * scale + mask
        pw = jax.nn.softmax(s, axis=-1)
        ah = jnp.einsum("blm,bmh->blh", pw, vh)
        a = ah.reshape(N, H, L, hd).transpose(2, 0, 1, 3).reshape(L, N, D)
        x = x + a @ p["w_out"] + p["b_out"][0]

        xn2 = _ln_ref(x, p["ln2_g"][0], p["ln2_b"][0])
        h = xn2 @ p["w_fc"] + p["b_fc"][0]
        h = h * jax.nn.sigmoid(1.702 * h)
        x = x + h @ p["w_proj"] + p["b_proj"][0]
    return x


# ----------------------------- parameter init --------------------------------

def init_params(key, width, layers):
    D = width
    params = []
    for _ in range(layers):
        key, *ks = jax.random.split(key, 7)
        params.append(dict(
            ln1_g=jnp.ones((1, D), jnp.float32),
            ln1_b=jnp.zeros((1, D), jnp.float32),
            w_qkv=0.02 * jax.random.normal(ks[0], (D, 3 * D), jnp.float32),
            b_qkv=0.02 * jax.random.normal(ks[1], (1, 3 * D), jnp.float32),
            w_out=0.02 * jax.random.normal(ks[2], (D, D), jnp.float32),
            b_out=jnp.zeros((1, D), jnp.float32),
            ln2_g=jnp.ones((1, D), jnp.float32),
            ln2_b=jnp.zeros((1, D), jnp.float32),
            w_fc=0.02 * jax.random.normal(ks[3], (D, 4 * D), jnp.float32),
            b_fc=0.02 * jax.random.normal(ks[4], (1, 4 * D), jnp.float32),
            w_proj=0.02 * jax.random.normal(ks[5], (4 * D, D), jnp.float32),
            b_proj=jnp.zeros((1, D), jnp.float32),
        ))
    return params


# ----------------------------- main -------------------------------------------

if __name__ == "__main__":
    L, N, D, H, layers = 8, 2, 32, 4, 2   # seq, batch, width, heads, layers
    key = jax.random.PRNGKey(0)
    k_x, k_p = jax.random.split(key)
    x = jax.random.normal(k_x, (L, N, D), jnp.float32)
    params = init_params(k_p, D, layers)
    prepped = prepare_params(params, heads=H)   # one-time bf16 conversion + scale fold

    # Case 1: no attention mask (visual transformer path).
    out = jax.block_until_ready(transformer_forward(x, prepped, heads=H, attn_mask=None))
    ref = reference_forward(x, params, heads=H, attn_mask=None)
    assert out.shape == (L, N, D)
    assert jnp.allclose(out, ref, atol=2e-2, rtol=2e-2), "mismatch (no mask)"

    # Case 2: CLIP causal mask (text transformer path).
    causal = jnp.triu(jnp.full((L, L), -jnp.inf, jnp.float32), k=1)
    out_m = jax.block_until_ready(transformer_forward(x, prepped, heads=H, attn_mask=causal))
    ref_m = reference_forward(x, params, heads=H, attn_mask=causal)
    assert jnp.allclose(out_m, ref_m, atol=2e-2, rtol=2e-2), "mismatch (causal mask)"

    print("KERNEL_OK")
</pallas_src>

<mosaic_0001>
module attributes {stable_mosaic.version = 11 : i64} {
  func.func @_probe(%arg0: i32, %arg1: memref<8x128xf32, #tpu.memory_space<vmem>>, %arg2: memref<8x128xf32, #tpu.memory_space<vmem>>, %arg3: memref<8x128xf32, #tpu.memory_space<vmem>>) attributes {dimension_semantics = [#tpu.dimension_semantics<arbitrary>], iteration_bounds = array<i64: 2>, scalar_prefetch = 0 : i64, scratch_operands = 0 : i64, tpu.core_type = #tpu.core_type<tc>, window_params = [{transform_indices = @transform_0, window_bounds = array<i64: 8, 128>}, {pipeline_mode = #tpu.pipeline_mode<synchronous>, transform_indices = @transform_1, window_bounds = array<i64: 8, 128>}, {transform_indices = @transform_2, window_bounds = array<i64: 8, 128>}]} {
    %c0 = arith.constant 0 : index
    %c0_0 = arith.constant 0 : index
    %0 = vector.load %arg1[%c0, %c0_0] : memref<8x128xf32, #tpu.memory_space<vmem>>, vector<8x128xf32>
    %c0_1 = arith.constant 0 : index
    %c0_2 = arith.constant 0 : index
    %1 = vector.load %arg2[%c0_1, %c0_2] : memref<8x128xf32, #tpu.memory_space<vmem>>, vector<8x128xf32>
    %2 = arith.addf %0, %1 : vector<8x128xf32>
    %c0_3 = arith.constant 0 : index
    %c0_4 = arith.constant 0 : index
    %3 = vector.load %arg3[%c0_3, %c0_4] : memref<8x128xf32, #tpu.memory_space<vmem>>, vector<8x128xf32>
    tpu.vector_store %arg3[%c0_3, %c0_4], %2 {strides = array<i32>} : memref<8x128xf32, #tpu.memory_space<vmem>>, vector<8x128xf32>,
    return
  }
  func.func @transform_0(%arg0: i32) -> (i32, i32) {
    %c0_i32 = arith.constant 0 : i32
    %c0_i32_0 = arith.constant 0 : i32
    return %arg0, %c0_i32 : i32, i32
  }
  func.func @transform_1(%arg0: i32) -> (i32, i32) {
    %c0_i32 = arith.constant 0 : i32
    %c0_i32_0 = arith.constant 0 : i32
    %c0_i32_1 = arith.constant 0 : i32
    return %c0_i32, %c0_i32_0 : i32, i32
  }
  func.func @transform_2(%arg0: i32) -> (i32, i32) {
    %c0_i32 = arith.constant 0 : i32
    %c0_i32_0 = arith.constant 0 : i32
    return %arg0, %c0_i32 : i32, i32
  }
}

module attributes {stable_mosaic.version = 11 : i64} {
  func.func @ln_qkv_kernel(%arg0: i32, %arg1: memref<16x32xf32, #tpu.memory_space<vmem>>, %arg2: memref<1x32xf32, #tpu.memory_space<vmem>>, %arg3: memref<1x32xf32, #tpu.memory_space<vmem>>, %arg4: memref<32x96xbf16, #tpu.memory_space<vmem>>, %arg5: memref<1x96xf32, #tpu.memory_space<vmem>>, %arg6: memref<16x96xbf16, #tpu.memory_space<vmem>>) attributes {dimension_semantics = [#tpu.dimension_semantics<parallel>], iteration_bounds = array<i64: 1>, scalar_prefetch = 0 : i64, scratch_operands = 0 : i64, tpu.core_type = #tpu.core_type<tc>, window_params = [{transform_indices = @transform_0, window_bounds = array<i64: 16, 32>}, {pipeline_mode = #tpu.pipeline_mode<synchronous>, transform_indices = @transform_1, window_bounds = array<i64: 1, 32>}, {pipeline_mode = #tpu.pipeline_mode<synchronous>, transform_indices = @transform_2, window_bounds = array<i64: 1, 32>}, {pipeline_mode = #tpu.pipeline_mode<synchronous>, transform_indices = @transform_3, window_bounds = array<i64: 32, 96>}, {pipeline_mode = #tpu.pipeline_mode<synchronous>, transform_indices = @transform_4, window_bounds = array<i64: 1, 96>}, {transform_indices = @transform_5, window_bounds = array<i64: 16, 96>}]} {
    %c0 = arith.constant 0 : index
    %c0_0 = arith.constant 0 : index
    %0 = vector.load %arg1[%c0, %c0_0] : memref<16x32xf32, #tpu.memory_space<vmem>>, vector<16x32xf32>
    %c0_1 = arith.constant 0 : index
    %c0_2 = arith.constant 0 : index
    %1 = vector.load %arg2[%c0_1, %c0_2] : memref<1x32xf32, #tpu.memory_space<vmem>>, vector<1x32xf32>
    %c0_3 = arith.constant 0 : index
    %c0_4 = arith.constant 0 : index
    %2 = vector.load %arg3[%c0_3, %c0_4] : memref<1x32xf32, #tpu.memory_space<vmem>>, vector<1x32xf32>
    %cst = arith.constant dense<0.000000e+00> : vector<16xf32>
    %3 = vector.multi_reduction <add>, %0, %cst [1] : vector<16x32xf32> to vector<16xf32>
    %4 = vector.shape_cast %3 : vector<16xf32> to vector<16x1xf32>
    %cst_5 = arith.constant 3.200000e+01 : f32
    %5 = vector.broadcast %cst_5 : f32 to vector<16x1xf32>
    %6 = arith.divf %4, %5 : vector<16x1xf32>
    %7 = vector.broadcast %6 : vector<16x1xf32> to vector<16x32xf32>
    %8 = arith.subf %0, %7 : vector<16x32xf32>
    %9 = arith.mulf %8, %8 : vector<16x32xf32>
    %cst_6 = arith.constant dense<0.000000e+00> : vector<16xf32>
    %10 = vector.multi_reduction <add>, %9, %cst_6 [1] : vector<16x32xf32> to vector<16xf32>
    %11 = vector.shape_cast %10 : vector<16xf32> to vector<16x1xf32>
    %cst_7 = arith.constant 3.200000e+01 : f32
    %12 = vector.broadcast %cst_7 : f32 to vector<16x1xf32>
    %13 = arith.divf %11, %12 : vector<16x1xf32>
    %14 = vector.broadcast %6 : vector<16x1xf32> to vector<16x32xf32>
    %15 = arith.subf %0, %14 : vector<16x32xf32>
    %cst_8 = arith.constant 9.99999974E-6 : f32
    %16 = vector.broadcast %cst_8 : f32 to vector<16x1xf32>
    %17 = arith.addf %13, %16 : vector<16x1xf32>
    %18 = math.rsqrt %17 : vector<16x1xf32>
    %19 = vector.broadcast %18 : vector<16x1xf32> to vector<16x32xf32>
    %20 = arith.mulf %15, %19 : vector<16x32xf32>
    %21 = vector.broadcast %1 : vector<1x32xf32> to vector<16x32xf32>
    %22 = arith.mulf %20, %21 : vector<16x32xf32>
    %23 = vector.broadcast %2 : vector<1x32xf32> to vector<16x32xf32>
    %24 = arith.addf %22, %23 : vector<16x32xf32>
    %25 = arith.truncf %24 : vector<16x32xf32> to vector<16x32xbf16>
    %c0_9 = arith.constant 0 : index
    %c0_10 = arith.constant 0 : index
    %26 = vector.load %arg4[%c0_9, %c0_10] : memref<32x96xbf16, #tpu.memory_space<vmem>>, vector<32x96xbf16>
    %cst_11 = arith.constant dense<0.000000e+00> : vector<16x96xf32>
    %27 = tpu.matmul %25, %26, %cst_11 {dimension_numbers = #tpu.dot_dimension_numbers<[1], [0], [0], [1], [0, 0, 1, 1], [], []>} : vector<16x32xbf16>, vector<32x96xbf16>, vector<16x96xf32> -> vector<16x96xf32>
    %c0_12 = arith.constant 0 : index
    %c0_13 = arith.constant 0 : index
    %28 = vector.load %arg5[%c0_12, %c0_13] : memref<1x96xf32, #tpu.memory_space<vmem>>, vector<1x96xf32>
    %29 = vector.broadcast %28 : vector<1x96xf32> to vector<16x96xf32>
    %30 = arith.addf %27, %29 : vector<16x96xf32>
    %31 = arith.truncf %30 : vector<16x96xf32> to vector<16x96xbf16>
    %c0_14 = arith.constant 0 : index
    %c0_15 = arith.constant 0 : index
    %32 = vector.load %arg6[%c0_14, %c0_15] : memref<16x96xbf16, #tpu.memory_space<vmem>>, vector<16x96xbf16>
    tpu.vector_store %arg6[%c0_14, %c0_15], %31 {strides = array<i32>} : memref<16x96xbf16, #tpu.memory_space<vmem>>, vector<16x96xbf16>,
    return
  }
  func.func @transform_0(%arg0: i32) -> (i32, i32) {
    %c0_i32 = arith.constant 0 : i32
    %c0_i32_0 = arith.constant 0 : i32
    return %arg0, %c0_i32 : i32, i32
  }
  func.func @transform_1(%arg0: i32) -> (i32, i32) {
    %c0_i32 = arith.constant 0 : i32
    %c0_i32_0 = arith.constant 0 : i32
    %c0_i32_1 = arith.constant 0 : i32
    return %c0_i32, %c0_i32_0 : i32, i32
  }
  func.func @transform_2(%arg0: i32) -> (i32, i32) {
    %c0_i32 = arith.constant 0 : i32
    %c0_i32_0 = arith.constant 0 : i32
    %c0_i32_1 = arith.constant 0 : i32
    return %c0_i32, %c0_i32_0 : i32, i32
  }
  func.func @transform_3(%arg0: i32) -> (i32, i32) {
    %c0_i32 = arith.constant 0 : i32
    %c0_i32_0 = arith.constant 0 : i32
    %c0_i32_1 = arith.constant 0 : i32
    return %c0_i32, %c0_i32_0 : i32, i32
  }
  func.func @transform_4(%arg0: i32) -> (i32, i32) {
    %c0_i32 = arith.constant 0 : i32
    %c0_i32_0 = arith.constant 0 : i32
    %c0_i32_1 = arith.constant 0 : i32
    return %c0_i32, %c0_i32_0 : i32, i32
  }
  func.func @transform_5(%arg0: i32) -> (i32, i32) {
    %c0_i32 = arith.constant 0 : i32
    %c0_i32_0 = arith.constant 0 : i32
    return %arg0, %c0_i32 : i32, i32
  }
}

</mosaic_0001>

<bundles_post_ra>
// kernel: tpu_custom_call.1
= control target key start
LH: loop header
LB: loop body
LE: loop exit
PB: predicated region body
PF: predicated region fallthrough
CT: control target
= control target key end

     0   :  { %7 = vsyncpa [#allocation3], 0  ;;  %s649_s0 = inlined_call_operand.hbm [shape: f32[16,128], index: 0, kind: input, shape index: {}]   ;;  %s650_s1 = inlined_call_operand.hbm [shape: f32[8,128], index: 1, kind: input, shape index: {}]   ;;  %s651_s2 = inlined_call_operand.hbm [shape: f32[16,128], index: 2, kind: output, shape index: {}]  }
   0x1   :  { %9 = vsyncpa [#allocation3 + $0x1], 0 }
   0x2   :  { %10 = vsyncpa [#allocation6], 0 }
   0x3   :  { %11 = vsyncpa [#allocation4], 0 }
   0x4   :  { %13 = vsyncpa [#allocation4 + $0x1], 0  ;;  %s483_s9 = smov 0   ;;  %s485_s10 = smov 0  }
   0x5   :  { %s487_s11 = smov 0   ;;  %s489_s12 = smov 0  }
   0x6 LB: > { %s504_s13 = sadd.s32 4294967295, %s463_s12   ;;  %s270_s14 = sadd.s32 4294967294, %s463_s12   ;;  %s463_s12 = sphi %s489_s12, %s674_s12   ;;  %s459_s11 = sphi %s487_s11, %s673_s11   ;;  %s455_s10 = sphi %s485_s10, %s672_s10   ;;  %s451_s9 = sphi %s483_s9, %s671_s9  }
   0x7   : > { %p39_p0 = scmp.ne.s32.totalorder %s455_s10, %s451_s9  ;;  %p652_p1 = scmp.eq.s32.totalorder %s504_s13, 0 }
   0x8   : > { %p90_p3 = scmp.eq.s32.totalorder %s270_s14, 1  ;;  %p271_p5 = scmp.ge.s32.totalorder %s463_s12, 1 }
   0x9   : > { %p513_p4 = por %p652_p1, %p39_p0  ;;  %p97_p7 = scmp.lt.s32.totalorder %s463_s12, 3 }
   0xa   : > { %p518_p6 = por %p90_p3, %p39_p0  ;;  %s465_s18 = smov [#allocation5]  }
   0xb   : > { %s656_s15 = scalar_select %p513_p4, 1, 0 }
   0xc   : > { %s657_s16 = scalar_select %p518_p6, 1, 0 }
   0xd   : > { %p523_p8 = pnand %p271_p5, %p97_p7  ;;  %s110_s19 = sshll.u32 %s465_s18, 4  ;;  %s111_s19 = int_to_ptr.vmem [resolvable:$true] %s110_s19 }
   0xe   : > { %s531_s20 = sadd.s32 1, %s463_s12   ;;  %s26_s24 = sadd.s32 1, %s459_s11 }
   0xf   : > { %s658_s17 = scalar_select %p523_p8, 1, 0 }
  0x10   : > { %p292_p10 = pneg %p523_p8  ;;  %s23_s22 = ssub.s32 %s463_s12, %s531_s20 }
  0x11   : > { %p541_p12 = scmp.eq.s32.totalorder %s23_s22, 0  ;;  %p33_p13 = scmp.ne.s32.totalorder %s459_s11, %s455_s10 }
  0x12   : > { %p535_p11 = pnand %p292_p10, %p652_p1  ;;  %s352_s25 = scalar_lea.vmem %s111_s19, 128 }
  0x13   : > { %p353_p3 = scmp.ne.s32.totalorder %s111_s19, %s352_s25  ;;  %p360_p9 = scmp.lt.s32.totalorder %s111_s19, %s111_s19 }
  0x14   : > { %p343_p0 = pneg %p535_p11  ;;  %p361_p2 = scmp.lt.s32.totalorder %s352_s25, %s352_s25 }
  0x16   : > { %p355_p5 = pnand %p353_p3, %p343_p0  ;;  %p362_p10 = por %p361_p2, %p360_p9 }
  0x18   : > { %p356_p7 = pneg %p355_p5 }
  0x1a   : > { %p363_p1 = pnand %p362_p10, %p356_p7 }
  0x1c   : > { %366 = shalt.err (!%p363_p1)
}
  0x1d   : > { %295 = dma.hbm_to_vmem [thread:$0]  (!%p535_p11), %s650_s1, 128, %s111_s19, [#allocation6]  }
  0x1e   : > { %s558_s28 = scalar_select %p541_p12, %s459_s11, %s26_s24  }
  0x1f   : > { %p34_p1 = scmp.eq.s32.totalorder %s463_s12, 0  ;;  %p661_p2 = scmp.eq.s32.totalorder %s504_s13, 1 }
  0x20   : > { %p305_p0 = scmp.lt.s32.totalorder %s463_s12, 2  ;;  %s121_s30 = sand.u32 1, %s459_s11  }
  0x21   : > { %p566_p9 = por %p661_p2, %p33_p13  ;;  %p35_p3 = por %p34_p1, %p33_p13 }
  0x22   : > { %s274_s3 = sshll.u32 %s121_s30, 3  ;;  %s275_s4 = sshll.u32 %s463_s12, 7 }
  0x23   : > { %s662_s29 = scalar_select %p566_p9, 1, 0 }
  0x24   : > { %s579_s7 = scalar_lea.hbm %s649_s0, %s275_s4  ;;  %s125_s8 = scalar_lea.vmem [#allocation2], %s274_s3 }
  0x25   : > { %s132_s14 = sshll.u32 %s125_s8, 4  ;;  %p581_p11 = pnand %p305_p0, %p35_p3  ;;  %s133_s14 = int_to_ptr.vmem [resolvable:$true] %s132_s14 }
  0x26   : > { %s122_s19 = scalar_lea.sflag [#allocation3], %s121_s30  ;;  %s367_s21 = scalar_lea.hbm %s579_s7, 128 }
  0x27   : > { %p368_p12 = scmp.ne.s32.totalorder %s579_s7, %s367_s21  ;;  %p369_p13 = pneg %p581_p11 }
  0x28   : > { %s372_s24 = scalar_lea.hbm %s649_s0, 256  ;;  %p373_p10 = scmp.lt.s32.totalorder %s579_s7, %s649_s0 }
  0x29   : > { %p370_p5 = pnand %p369_p13, %p368_p12  ;;  %p374_p1 = scmp.lt.s32.totalorder %s372_s24, %s367_s21 }
  0x2b   : > { %p371_p7 = pneg %p370_p5  ;;  %p375_p2 = por %p374_p1, %p373_p10 }
  0x2d   : > { %p376_p0 = pnand %p375_p2, %p371_p7 }
  0x2f   : > { %379 = shalt.err (!%p376_p0)
}
  0x30   : > { %s380_s27 = scalar_lea.vmem %s133_s14, 128  ;;  %s466_s30 = smov [#allocation2]  }
  0x31   : > { %p381_p3 = scmp.ne.s32.totalorder %s133_s14, %s380_s27  ;;  %s385_s3 = sshll.u32 %s466_s30, 4  ;;  %s386_s3 = int_to_ptr.vmem [resolvable:$false] %s385_s3 }
  0x32   : > { %s387_s4 = scalar_lea.vmem %s386_s3, 256  ;;  %p388_p12 = scmp.lt.s32.totalorder %s133_s14, %s386_s3 }
  0x33   : > { %p383_p6 = pnand %p381_p3, %p369_p13  ;;  %p389_p5 = scmp.lt.s32.totalorder %s387_s4, %s380_s27 }
  0x35   : > { %p384_p9 = pneg %p383_p6  ;;  %p390_p4 = por %p389_p5, %p388_p12 }
  0x37   : > { %p391_p8 = pnand %p390_p4, %p384_p9 }
  0x39   : > { %394 = shalt.err (!%p391_p8)
}
  0x3a   : > { %299 = dma.hbm_to_vmem [thread:$0]  (!%p581_p11), %s579_s7, 128, %s133_s14, %s122_s19  }
  0x3b   : > { %p664_p7 = scmp.ne.s32.totalorder %s658_s17, 0 }
  0x3c   : > { %s602_s5 = sand.u32 (!%p664_p7), 1, %s455_s10   ;;  %p665_p6 = scmp.ne.s32.totalorder (!%p664_p7), %s656_s15, 0 }
  0x3d   : > { %141 = sbr.rel (%p664_p7) target bundleno = 95 (0x5f), region = 28  ;;  %s277_s6 = sshll.u32 (!%p664_p7), %s602_s5, 3 }
  0x3e   : > { %s144_s8 = scalar_lea.sflag (!%p664_p7), [#allocation3], %s602_s5  ;;  %s147_s21 = scalar_lea.vmem (!%p664_p7), [#allocation2], %s277_s6 }
  0x42   : > { %438 = dma.done.wait (%p665_p6), %s144_s8, 128  }
  0x43   : > { %440 = vsyncadd (%p665_p6), %s144_s8, 4294967168  ;;  %p666_p4 = scmp.eq.s32.totalorder %s504_s13, 0 }
  0x45   : > { %442 = dma.done.wait (%p666_p4), [#allocation6], 128   ;;  %p667_p8 = pmov %p666_p4 }
  0x46   : > { %s171_s17 = scalar_lea.vmem [#allocation7], %s277_s6  ;;  %s281_s14 = sshll.u32 %s504_s13, 7  ;;  %v172_v0 = vld [vmem:[%s147_s21] sm:$0xff]  ;;  %v173_v1 = vld [vmem:[#allocation5] sm:$0xff] }
  0x47   : > { %444 = vsyncadd (%p667_p8), [#allocation6], 4294967168  ;;  %s190_s7 = sshll.u32 %s171_s17, 4  ;;  %v174_v2 = vadd.f32 %v173_v1, %v172_v0  ;;  %s188_s15 = scalar_lea.hbm %s651_s2, %s281_s14  ;;  %s191_s7 = int_to_ptr.vmem [resolvable:$true] %s190_s7 }
  0x48   : > { %s177_s22 = scalar_lea.sflag [#allocation4], %s602_s5  ;;  %s395_s23 = scalar_lea.vmem %s191_s7, 128 }
  0x49   : > { %175 = vst [vmem:[%s171_s17] sm:$0xff] %v174_v2  ;;  %p396_p9 = scmp.ne.s32.totalorder %s191_s7, %s395_s23  ;;  %p668_p11 = scmp.ne.s32.totalorder %s662_s29, 0 }
  0x4a   : > { %s467_s24 = smov [#allocation7]  }
  0x4b   : > { %p397_p13 = pnand %p396_p9, %p668_p11  ;;  %s399_s25 = sshll.u32 %s467_s24, 4  ;;  %s400_s25 = int_to_ptr.vmem [resolvable:$false] %s399_s25 }
  0x4c   : > { %s401_s26 = scalar_lea.vmem %s400_s25, 256  ;;  %p402_p1 = scmp.lt.s32.totalorder %s191_s7, %s400_s25 }
  0x4d   : > { %p398_p10 = pneg %p397_p13  ;;  %p403_p2 = scmp.lt.s32.totalorder %s401_s26, %s395_s23 }
  0x4f   : > { %p404_p0 = por %p403_p2, %p402_p1 }
  0x51   : > { %p405_p3 = pnand %p404_p0, %p398_p10 }
  0x53   : > { %408 = shalt.err (!%p405_p3)
}
  0x54   : > { %s409_s13 = scalar_lea.hbm %s188_s15, 128  ;;  %s413_s3 = scalar_lea.hbm %s651_s2, 256 }
  0x55   : > { %p410_p12 = scmp.ne.s32.totalorder %s188_s15, %s409_s13  ;;  %p414_p6 = scmp.lt.s32.totalorder %s188_s15, %s651_s2 }
  0x56   : > { %p415_p4 = scmp.lt.s32.totalorder %s413_s3, %s409_s13 }
  0x57   : > { %p411_p5 = pnand %p410_p12, %p668_p11 }
  0x58   : > { %p416_p8 = por %p415_p4, %p414_p6 }
  0x59   : > { %p412_p7 = pneg %p411_p5 }
  0x5b   : > { %p417_p9 = pnand %p416_p8, %p412_p7 }
  0x5d   : > { %420 = shalt.err (!%p417_p9)
}
  0x5e   : > { %290 = dma.vmem_to_hbm [thread:$0]  (%p668_p11), %s191_s7, 128, %s188_s15, %s177_s22  }
  0x5f PF: > { %s202_s6 = sand.u32 1, %s451_s9   ;;  %p669_p13 = scmp.ne.s32.totalorder %s657_s16, 0 }
  0x60   : > { %p670_p10 = scmp.ge.s32.totalorder %s463_s12, 2  ;;  %s203_s8 = scalar_lea.sflag [#allocation4], %s202_s6 }
  0x62   : > { %p301_p1 = pnand %p670_p10, %p669_p13 }
  0x64   : > { %p302_p2 = pneg %p301_p1 }
  0x66   : > { %446 = dma.done.wait (%p302_p2), %s203_s8, 128  }
  0x67   : > { %448 = vsyncadd (%p302_p2), %s203_s8, 4294967168  ;;  %p16_p0 = scmp.ge.s32.totalorder %s531_s20, 4   ;;  %s671_s9 = smov %s455_s10 }
  0x68   : > { %s672_s10 = smov %s459_s11  ;;  %s673_s11 = smov %s558_s28 }
  0x69   : > { %s674_s12 = smov %s531_s20  ;;  %18 = sbr.rel (!%p16_p0) target bundleno = 6 (0x6), region = 77 }
  0x6e   :  { %208 = vsyncpa [#allocation3], 1 }
  0x6f   :  { %210 = vsyncpa [#allocation3 + $0x1], 1 }
  0x70   :  { %211 = vsyncpa [#allocation6], 1 }
  0x71   :  { %212 = vsyncpa [#allocation4], 1 }
  0x72   :  { %214 = vsyncpa [#allocation4 + $0x1], 1 }

// kernel: tpu_custom_call.1
= control target key start
LH: loop header
LB: loop body
LE: loop exit
PB: predicated region body
PF: predicated region fallthrough
CT: control target
= control target key end

     0   :  { %10 = vsyncpa [#allocation3], 0  ;;  %s365_s0 = inlined_call_operand.hbm [shape: f32[16,32], index: 0, kind: input, shape index: {}]   ;;  %s366_s1 = inlined_call_operand.vmem [shape: f32[1,32], index: 1, kind: input, shape index: {}]   ;;  %s367_s2 = inlined_call_operand.vmem [shape: f32[1,32], index: 2, kind: input, shape index: {}]   ;;  %s368_s3 = inlined_call_operand.hbm [shape: bf16[32,96], index: 3, kind: input, shape index: {}]   ;;  %s369_s4 = inlined_call_operand.vmem [shape: f32[1,96], index: 4, kind: input, shape index: {}]   ;;  %s370_s5 = inlined_call_operand.hbm [shape: bf16[16,96], index: 5, kind: output, shape index: {}]  }
   0x1   :  { %11 = vsyncpa [#allocation6], 0 }
   0x2   :  { %12 = vsyncpa [#allocation4], 0  ;;  %s297_s18 = smov [#allocation2]  }
   0x3   :  { %s18_s19 = sshll.u32 %s297_s18, 4  ;;  %s19_s19 = int_to_ptr.vmem [resolvable:$true] %s18_s19 }
   0x4   :  { %s239_s20 = scalar_lea.vmem %s19_s19, 256  ;;  %p244_p1 = scmp.lt.s32.totalorder %s19_s19, %s19_s19 }
   0x5   :  { %p240_p0 = scmp.ne.s32.totalorder %s19_s19, %s239_s20  ;;  %p245_p2 = scmp.lt.s32.totalorder %s239_s20, %s239_s20 }
   0x7   :  { %p246_p3 = por %p245_p2, %p244_p1 }
   0x9   :  { %p247_p4 = pnand %p246_p3, %p240_p0 }
   0xb   :  { %250 = shalt.err (!%p247_p4)
}
   0xc   :  { %s298_s21 = smov 128   ;;  %s299_s22 = smov 8  }
   0xd   :  { %24 = dma.hbm_to_vmem [thread:$0]  %s365_s0, 256, %s19_s19, [#allocation3], %s298_s21, %s298_s21, %s299_s22  }
   0xe   :  { %s300_s25 = smov [#allocation5]  }
   0xf   :  { %s34_s26 = sshll.u32 %s300_s25, 4  ;;  %s35_s26 = int_to_ptr.vmem [resolvable:$true] %s34_s26 }
  0x10   :  { %s259_s27 = scalar_lea.vmem %s35_s26, 256  ;;  %p264_p6 = scmp.lt.s32.totalorder %s35_s26, %s35_s26 }
  0x11   :  { %p260_p5 = scmp.ne.s32.totalorder %s35_s26, %s259_s27  ;;  %p265_p7 = scmp.lt.s32.totalorder %s259_s27, %s259_s27 }
  0x13   :  { %p266_p8 = por %p265_p7, %p264_p6 }
  0x15   :  { %p267_p9 = pnand %p266_p8, %p260_p5 }
  0x17   :  { %270 = shalt.err (!%p267_p9)
}
  0x18   :  { %s301_s28 = smov 64   ;;  %s302_s29 = smov 4  }
  0x19   :  { %40 = dma.hbm_to_vmem [thread:$0]  %s368_s3, 256, %s35_s26, [#allocation6], %s301_s28, %s301_s28, %s302_s29  }
  0x1a   :  { %291 = dma.done.wait [#allocation3], 256  }
  0x1b   :  { %292 = vsyncadd [#allocation3], 4294967040 }
  0x1c   :  { %293 = dma.done.wait [#allocation6], 256  }
  0x1d   :  { %294 = vsyncadd [#allocation6], 4294967040  ;;  %vm54_vm0 = vcmask 261120   ;;  %v50_v0 = vld [vmem:[#allocation2] sm:$0xff]  ;;  %v51_v1 = vld [vmem:[#allocation2 + $0x8] sm:$0xff]  ;;  %v303_v15 = vmov 0.0  }
  0x1e   :  { %v55_v2 = vsel %vm54_vm0, %v50_v0, 0.0  ;;  %v58_v3 = vsel %vm54_vm0, %v51_v1, 0.0  ;;  %v225_v14 = vld [vmem:[#allocation5 + $0x8] sm:$0xff]   ;;  %208 = vmatprep.subr.bf16.mxu0 %v303_v15  ;;  %vm304_vm1 = vmmov 0   ;;  %v226_v16 = vld [vmem:[#allocation5] sm:$0xff]   ;;  %vm174_vm2 = vcmask 781312  }
  0x1f   :  { %56 = vadd.xlane.f32.xlu0 %v55_v2  ;;  %212 = vmatprep.mubr.msk.bf16.mxu0 %vm304_vm1, %v303_v15  ;;  %v195_v25 = vld [vmem:[%s366_s1] ss:$0 sm:$0xff]  ;;  %s305_s1 = smov [#allocation7]  }
  0x20   :  { %209 = vmatpush3.bf16.msra.mxu0 %v225_v14  ;;  %v196_v29 = vld [vmem:[%s367_s2] ss:$0 sm:$0xff]  ;;  %s182_s11 = sshll.u32 %s305_s1, 4  ;;  %s183_s11 = int_to_ptr.vmem [resolvable:$true] %s182_s11 }
  0x21   :  { %210 = vmatprep.subr.bf16.mxu0 %v303_v15  ;;  %v197_v34 = vld [vmem:[%s369_s4] ss:$0 sm:$0xff]  ;;  %s271_s2 = scalar_lea.vmem %s183_s11, 128  ;;  %p276_p11 = scmp.lt.s32.totalorder %s183_s11, %s183_s11 }
  0x22   :  { %p272_p10 = scmp.ne.s32.totalorder %s183_s11, %s271_s2  ;;  %p277_p12 = scmp.lt.s32.totalorder %s271_s2, %s271_s2 }
  0x23   :  { %59 = vadd.xlane.f32.xlu0 %v58_v3 }
  0x24   :  { %211 = vmatpush3.bf16.msra.mxu0 %v226_v16  ;;  %p278_p13 = por %p277_p12, %p276_p11 }
  0x26   :  { %p279_p0 = pnand %p278_p13, %p272_p10 }
  0xa8   :  { %v57_v4 = vpop.xlane.xlu0 %56 }
  0xa9   :  { %v62_v5 = vmul.f32 0.03125, %v57_v4 }
  0xab   :  { %v64_v6 = vsub.f32 %v50_v0, %v62_v5 }
  0xac   :  { %v60_v7 = vpop.xlane.xlu0 %59 }
  0xad   :  { %v63_v8 = vmul.f32 0.03125, %v60_v7  ;;  %v66_v9 = vmul.f32 %v64_v6, %v64_v6 }
  0xaf   :  { %v65_v10 = vsub.f32 %v51_v1, %v63_v8  ;;  %v68_v11 = vsel %vm54_vm0, %v66_v9, 0.0 }
  0xb0   :  { %69 = vadd.xlane.f32.xlu1 %v68_v11 }
  0xb1   :  { %v67_v12 = vmul.f32 %v65_v10, %v65_v10 }
  0xb3   :  { %v71_v13 = vsel %vm54_vm0, %v67_v12, 0.0 }
  0xb4   :  { %72 = vadd.xlane.f32.xlu1 %v71_v13 }
 0x139   :  { %v70_v17 = vpop.xlane.xlu1 %69 }
 0x13a   :  { %v74_v18 = vmul.f32 0.03125, %v70_v17 }
 0x13c   :  { %v76_v19 = vadd.f32 1e-05, %v74_v18 }
 0x13d   :  { %v73_v20 = vpop.xlane.xlu1 %72 }
 0x13e   :  { %227 = vrsqrt.f32 %v76_v19  ;;  %v75_v21 = vmul.f32 0.03125, %v73_v20 }
 0x140   :  { %v77_v22 = vadd.f32 1e-05, %v75_v21 }
 0x142   :  { %229 = vrsqrt.f32 %v77_v22 }
 0x14b   :  { %v228_v23 = vpop.eup %227 }
 0x14c   :  { %v80_v24 = vmul.f32 %v228_v23, %v64_v6 }
 0x14e   :  { %v88_v28 = vmul.f32 %v195_v25, %v80_v24 }
 0x14f   :  { %v230_v26 = vpop.eup %229 }
 0x150   :  { %v81_v27 = vmul.f32 %v230_v26, %v65_v10  ;;  %v96_v31 = vadd.f32 %v196_v29, %v88_v28 }
 0x152   :  { %v89_v30 = vmul.f32 %v195_v25, %v81_v27 }
 0x154   :  { %v97_v32 = vadd.f32 %v196_v29, %v89_v30 }
 0x156   :  { %v98_v33 = vpack.c.bf16 %v97_v32, %v96_v31 }
 0x158   :  { %213 = vmatmul.mubr.msk.bf16.vlgmr.msra.gmra.mxu0 %vm54_vm0, %v98_v33 }
 0x218   :  { %v159_v35 = vpop.f32.mrf.mxu0 }
 0x219   :  { %v160_v36 = vadd.f32 %v197_v34, %v159_v35 }
 0x21a   :  { %v214_v37 = vpop.f32.mrf.mxu0 }
 0x21b   :  { %v203_v38 = vpack.c.bf16 %v160_v36, %v160_v36 }
 0x21c   :  { %v162_v39 = vpop.f32.mrf.mxu0 }
 0x21d   :  { %v163_v40 = vadd.f32 %v197_v34, %v162_v39  ;;  %175 = vst.msk [vmem:[#allocation7] sm:$0xf] %vm174_vm2, %v203_v38 }
 0x21e   :  { %v215_v41 = vpop.f32.mrf.mxu0 }
 0x21f   :  { %v204_v42 = vpack.c.bf16 %v163_v40, %v163_v40 }
 0x221   :  { %176 = vst.msk [vmem:[#allocation7 + $0x4] sm:$0xf] %vm174_vm2, %v204_v42 }
 0x222   :  { %282 = shalt.err (!%p279_p0)
}
 0x223   :  { %188 = dma.vmem_to_hbm [thread:$0]  %s183_s11, 128, %s370_s5, [#allocation4], %s301_s28, %s301_s28, %s302_s29  }
 0x224   :  { %295 = dma.done.wait [#allocation4], 128  }
 0x225   :  { %296 = vsyncadd [#allocation4], 4294967168 }
 0x226   :  { %192 = vsyncpa [#allocation3], 1 }
 0x227   :  { %193 = vsyncpa [#allocation6], 1 }
 0x228   :  { %194 = vsyncpa [#allocation4], 1 }

</bundles_post_ra>
